<compile_context>
chip_gen: v5e
topology: v5e:2x2
jax: 0.10.0
libtpu: 0.0.40
codegen_flags: <defaults>
</compile_context>

<pallas_src>
import functools

import numpy as np
import jax
import jax.numpy as jnp
from jax.experimental import pallas as pl
from jax.experimental.pallas import tpu as pltpu

BAG_SIZE = 32            # stands in for config.BAG_SIZE
N_PAD_UNIT = 128         # lane-dense output width
MAX_NODES_PER_STEP = 8   # NB: tree nodes fused into one grid step


def _round_up(x, m):
    return ((x + m - 1) // m) * m


# ---------------------------------------------------------------------------
# Pallas kernel: one grid step == NB bag-tree nodes
#   y_n = [x_exp_n | x_raw_n] @ W_n + b_n ; y_n[mask_n != 0] = -inf
# ---------------------------------------------------------------------------
@functools.lru_cache(maxsize=None)
def _make_kernel(nb):
    def kernel(xcat_ref, w_ref, b_ref, m_ref, o_ref):
        # Static unroll over the NB nodes of this block (NB is small).
        for n in range(nb):
            # single fused 2K-deep contraction on the MXU, f32 accumulation
            y = jnp.dot(xcat_ref[n], w_ref[n], preferred_element_type=jnp.float32)
            y = y + b_ref[n]                          # (1, N_pad) f32 broadcast
            y = jnp.where(m_ref[n] != 0, -jnp.inf, y)  # masked_fill, f32 VPU
            o_ref[n] = y.astype(o_ref.dtype)           # bf16 store (halved vst)
    return kernel


def bag_tree_forward(XCAT, W, B, MASK, nb):
    """One pallas_call for the whole tree; grid axis = node-block (parallel)."""
    n_nodes_pad, M_pad, K2 = XCAT.shape
    N_pad = W.shape[-1]
    n_blocks = n_nodes_pad // nb

    out_bytes = n_nodes_pad * M_pad * N_pad * 2
    block_bytes = nb * (M_pad * K2 * 2 + K2 * N_pad * 2 + N_pad * 4
                        + M_pad * N_pad * 1 + M_pad * N_pad * 2)
    vmem_limit = int(min(48 * 2**20, max(16 * 2**20, 8 * block_bytes)))

    cost = pl.CostEstimate(
        flops=2 * n_nodes_pad * M_pad * K2 * N_pad,
        transcendentals=0,
        bytes_accessed=(XCAT.size * 2 + W.size * 2 + B.size * 4
                        + MASK.size + out_bytes),
    )

    # TODO(synk): if sum(x_len) grows to many hundreds of rows, add an M tiling
    # grid axis instead of growing M_pad monolithically (vreg/VMEM pressure,
    # especially on v7x's 64 MiB VMEM).
    return pl.pallas_call(
        _make_kernel(nb),
        out_shape=jax.ShapeDtypeStruct((n_nodes_pad, M_pad, N_pad), jnp.bfloat16),
        grid=(n_blocks,),
        in_specs=[
            pl.BlockSpec((nb, M_pad, K2), lambda i: (i, 0, 0)),     # [x_exp|x_raw] bf16
            pl.BlockSpec((nb, K2, N_pad), lambda i: (i, 0, 0)),     # fused weight bf16
            pl.BlockSpec((nb, 1, N_pad), lambda i: (i, 0, 0)),      # bias f32
            pl.BlockSpec((nb, M_pad, N_pad), lambda i: (i, 0, 0)),  # int8 mask
        ],
        out_specs=pl.BlockSpec((nb, M_pad, N_pad), lambda i: (i, 0, 0)),
        compiler_params=pltpu.CompilerParams(
            dimension_semantics=("parallel",),
            vmem_limit_bytes=vmem_limit,
        ),
        cost_estimate=cost,
    )(XCAT, W, B, MASK)


# ---------------------------------------------------------------------------
# Bag-tree data structures (mirroring the PyTorch module)
# ---------------------------------------------------------------------------
class Meta:
    def __init__(self, feat_idx, bags):
        self.feat_idx = feat_idx      # list of (start, end)
        self.bags = bags              # list of (fid, Meta)


class Bag:
    def __init__(self, x_raw, x_mask, x_len, x_bags):
        self.x_raw = x_raw            # [sum(x_len), BAG_SIZE] or None at root
        self.x_mask = x_mask          # [M, feat_cnt]
        self.x_len = x_len            # python list of ints (static)
        self.x_bags = x_bags          # list of Bag or None


class Result_Out:
    def __init__(self, x, x_len, x_bags):
        self.x = x
        self.x_len = x_len
        self.x_bags = x_bags


def _rebuild(plan, node_outs):
    rec_id, x_len, child_plans = plan
    subs = [None if cp is None else _rebuild(cp, node_outs) for cp in child_plans]
    return Result_Out(node_outs[rec_id], x_len, subs)


# ---------------------------------------------------------------------------
# BagOutput (whole tree batched into one kernel call)
# ---------------------------------------------------------------------------
class BagOutputPallas:
    def __init__(self, meta, root, key):
        feat_cnt = len(meta.feat_idx)
        in_dim = BAG_SIZE if root else 2 * BAG_SIZE
        kw, kb, key = jax.random.split(key, 3)
        bound = 1.0 / np.sqrt(in_dim)
        # weight stored as [in_dim, feat_cnt] (transposed vs torch.nn.Linear)
        self.w = jax.random.uniform(kw, (in_dim, feat_cnt), jnp.float32, -bound, bound)
        self.b = jax.random.uniform(kb, (1, feat_cnt), jnp.float32, -bound, bound)
        self.root = root
        self.meta = meta
        self.feat_cnt = feat_cnt
        self.sub_bags = []
        for fid, sub_meta in meta.bags:
            key, sk = jax.random.split(key)
            self.sub_bags.append(BagOutputPallas(sub_meta, root=False, key=sk))
        if root:
            # hoist parameter padding out of forward: one global N_pad for the
            # whole tree, per-module padded bf16 weights / f32 bias built once.
            self.n_pad = _round_up(max(1, self._max_feat_cnt()), N_PAD_UNIT)
            self._finalize_params(self.n_pad)
            self._wb_cache = {}

    def _max_feat_cnt(self):
        m = self.feat_cnt
        for sb in self.sub_bags:
            m = max(m, sb._max_feat_cnt())
        return m

    def _finalize_params(self, n_pad):
        K = BAG_SIZE
        # weight padded to [2K, N_pad]; the root fills only the first K rows,
        # so its (zero) x_raw half of XCAT is neutralized by zero W[K:].
        w_full = jnp.zeros((2 * K, n_pad), jnp.float32)
        w_full = w_full.at[: self.w.shape[0], : self.feat_cnt].set(self.w)
        self.w_pad = w_full.astype(jnp.bfloat16)
        self.b_pad = jnp.zeros((1, n_pad), jnp.float32).at[:, : self.feat_cnt].set(self.b)
        for sb in self.sub_bags:
            sb._finalize_params(n_pad)

    # -- static tree flattening (python lists only) -------------------------
    def _collect(self, bag, parent_idx, records):
        if self.root:
            idx = parent_idx
        else:
            # chained seg_expand expressed as a composed row-index into the
            # top-level x_0 (static python ints).
            idx = np.repeat(parent_idx, np.asarray(bag.x_len, dtype=np.int64))
        rec_id = len(records)
        records.append(dict(module=self, bag=bag, idx=idx))
        child_plans = []
        for bid, (fid, sub_meta) in enumerate(self.meta.bags):
            sbag = bag.x_bags[bid]
            if sbag is None:
                child_plans.append(None)
            else:
                # PyTorch passes this node's (expanded) x_0 down: children
                # compose their expansion on top of `idx`.
                child_plans.append(self.sub_bags[bid]._collect(sbag, idx, records))
        return (rec_id, bag.x_len, child_plans)

    def __call__(self, x_0, bag):
        assert self.root, "call the root module"
        K = BAG_SIZE
        n_root = x_0.shape[0]
        records = []
        plan = self._collect(bag, np.arange(n_root, dtype=np.int64), records)

        n_nodes = len(records)
        m_sizes = [len(r["idx"]) for r in records]
        f_sizes = [r["module"].feat_cnt for r in records]
        M_pad = max(32, _round_up(max(m_sizes), 32))      # int8 tile = (32,128)
        N_pad = self.n_pad
        NB = min(MAX_NODES_PER_STEP, n_nodes)             # nodes per grid step
        n_nodes_pad = _round_up(n_nodes, NB)
        pad_n = n_nodes_pad - n_nodes

        # ---- stacked padded weights / bias (padding hoisted to init; stack
        # cached per live-tree structure) ----------------------------------
        wb_key = (tuple(id(r["module"]) for r in records), n_nodes_pad)
        if wb_key not in self._wb_cache:
            w_list = [r["module"].w_pad for r in records]
            b_list = [r["module"].b_pad for r in records]
            if pad_n:
                w_list += [jnp.zeros_like(w_list[0])] * pad_n
                b_list += [jnp.zeros_like(b_list[0])] * pad_n
            self._wb_cache[wb_key] = (jnp.stack(w_list), jnp.stack(b_list))
        W, B = self._wb_cache[wb_key]

        # ---- x_exp via a single XLA gather (no one-hot matmul, no E) ------
        x0_bf = x_0.astype(jnp.bfloat16)
        idx_pad = np.zeros((n_nodes_pad, M_pad), np.int32)
        for i, r in enumerate(records):
            idx_pad[i, : len(r["idx"])] = r["idx"]
        XEXP = x0_bf[jnp.asarray(idx_pad)]                # (n_nodes_pad, M_pad, K)

        # ---- x_raw + int8 mask (data-dependent, built per call) -----------
        xraw_l, m_l = [], []
        for r in records:
            bg, mi, fc = r["bag"], len(r["idx"]), r["module"].feat_cnt
            if bg.x_raw is None:      # root node: Linear(K); W[K:] is zero
                xraw_l.append(jnp.zeros((M_pad, K), jnp.bfloat16))
            else:
                xr = bg.x_raw.astype(jnp.bfloat16)
                xraw_l.append(jnp.pad(xr, ((0, M_pad - xr.shape[0]), (0, 0))))
            mk = (bg.x_mask >= 1.0).astype(jnp.int8)      # exact torch semantics
            m_l.append(jnp.pad(mk, ((0, M_pad - mi), (0, N_pad - fc))))
        if pad_n:
            xraw_l += [jnp.zeros((M_pad, K), jnp.bfloat16)] * pad_n
            m_l += [jnp.zeros((M_pad, N_pad), jnp.int8)] * pad_n
        XRAW = jnp.stack(xraw_l)
        MASK = jnp.stack(m_l)
        # fused 2K-deep contraction input: replaces torch.cat((x_exp, x_raw), 1)
        XCAT = jnp.concatenate([XEXP, XRAW], axis=-1)     # (n, M_pad, 2K) bf16

        out = bag_tree_forward(XCAT, W, B, MASK, NB)

        # NOTE: rows/cols beyond (m_sizes, f_sizes) are padding garbage and are
        # sliced off here; never consume the raw padded kernel output.
        node_outs = [out[i, : m_sizes[i], : f_sizes[i]].astype(jnp.float32)
                     for i in range(n_nodes)]
        return _rebuild(plan, node_outs)


# ---------------------------------------------------------------------------
# Plain-JAX float32 reference with exact PyTorch BagOutput semantics
# ---------------------------------------------------------------------------
def ref_forward(module, x_0, bag):
    if not module.root:
        idx = np.repeat(np.arange(x_0.shape[0]), np.asarray(bag.x_len, dtype=np.int64))
        x_0 = x_0[jnp.asarray(idx)]
        x = jnp.concatenate((x_0, bag.x_raw), axis=1)
    else:
        x = x_0
    y = x @ module.w + module.b
    y = jnp.where(bag.x_mask >= 1.0, -jnp.inf, y)
    subs = []
    for bid, _ in enumerate(module.meta.bags):
        sbag = bag.x_bags[bid]
        subs.append(None if sbag is None else ref_forward(module.sub_bags[bid], x_0, sbag))
    return Result_Out(y, bag.x_len, subs)


def _compare(a, b, rtol=5e-2, atol=5e-2):
    np.testing.assert_allclose(np.asarray(a.x), np.asarray(b.x), rtol=rtol, atol=atol)
    assert list(a.x_len) == list(b.x_len)
    assert len(a.x_bags) == len(b.x_bags)
    for sa, sb in zip(a.x_bags, b.x_bags):
        if sb is None:
            assert sa is None
        else:
            _compare(sa, sb)


# ---------------------------------------------------------------------------
# Example run
# ---------------------------------------------------------------------------
if __name__ == "__main__":
    key = jax.random.PRNGKey(0)

    # Meta tree: root (8 feats) -> sub A (6 feats) -> grandchild (4 feats);
    # root also has a second sub-bag slot that is None in the data.
    grand_meta = Meta(feat_idx=[(i, i + 1) for i in range(4)], bags=[])
    sub_meta_a = Meta(feat_idx=[(i, i + 1) for i in range(6)], bags=[(0, grand_meta)])
    sub_meta_b = Meta(feat_idx=[(i, i + 1) for i in range(6)], bags=[])
    root_meta = Meta(feat_idx=[(i, i + 1) for i in range(8)],
                     bags=[(3, sub_meta_a), (5, sub_meta_b)])

    key, k0, k1, k2, k3, k4, k5, kp = jax.random.split(key, 8)

    n_root = 4
    x_0 = jax.random.normal(k0, (n_root, BAG_SIZE), jnp.float32)

    # grandchild bag: expands sub A's 8 rows into 10
    grand_len = [1, 1, 2, 1, 1, 1, 2, 1]          # len == 8, sum == 10
    m_grand = sum(grand_len)
    grand_bag = Bag(
        x_raw=jax.random.normal(k4, (m_grand, BAG_SIZE), jnp.float32),
        x_mask=(jax.random.uniform(k5, (m_grand, 4)) > 0.7).astype(jnp.float32),
        x_len=grand_len,
        x_bags=[],
    )

    # sub-bag A: expands the 4 root rows into 8
    sub_len = [2, 1, 3, 2]
    m_sub = sum(sub_len)
    sub_bag_a = Bag(
        x_raw=jax.random.normal(k1, (m_sub, BAG_SIZE), jnp.float32),
        x_mask=(jax.random.uniform(k2, (m_sub, 6)) > 0.7).astype(jnp.float32),
        x_len=sub_len,
        x_bags=[grand_bag],
    )

    root_bag = Bag(
        x_raw=None,
        x_mask=(jax.random.uniform(k3, (n_root, 8)) > 0.7).astype(jnp.float32),
        x_len=[1] * n_root,
        x_bags=[sub_bag_a, None],
    )

    model = BagOutputPallas(root_meta, root=True, key=kp)
    res = model(x_0, root_bag)
    jax.block_until_ready(res.x)

    # structural checks
    assert res.x.shape == (n_root, 8)
    assert res.x_bags[0].x.shape == (m_sub, 6)
    assert res.x_bags[1] is None
    assert res.x_bags[0].x_bags[0].x.shape == (m_grand, 4)

    # numerical check against the float32 PyTorch-semantics reference
    # (kernel runs bf16 matmuls with f32 accumulation, bf16 output -> loose tol)
    ref = ref_forward(model, x_0, root_bag)
    _compare(res, ref)

    print("KERNEL_OK")
</pallas_src>

<mosaic_0001>
module attributes {stable_mosaic.version = 11 : i64} {
  func.func @kernel(%arg0: i32, %arg1: memref<3x32x64xbf16, #tpu.memory_space<vmem>>, %arg2: memref<3x64x128xbf16, #tpu.memory_space<vmem>>, %arg3: memref<3x1x128xf32, #tpu.memory_space<vmem>>, %arg4: memref<3x32x128xi8, #tpu.memory_space<vmem>>, %arg5: memref<3x32x128xbf16, #tpu.memory_space<vmem>>) attributes {dimension_semantics = [#tpu.dimension_semantics<parallel>], iteration_bounds = array<i64: 1>, scalar_prefetch = 0 : i64, scratch_operands = 0 : i64, tpu.core_type = #tpu.core_type<tc>, window_params = [{transform_indices = @transform_0, window_bounds = array<i64: 3, 32, 64>}, {transform_indices = @transform_1, window_bounds = array<i64: 3, 64, 128>}, {transform_indices = @transform_2, window_bounds = array<i64: 3, 1, 128>}, {transform_indices = @transform_3, window_bounds = array<i64: 3, 32, 128>}, {transform_indices = @transform_4, window_bounds = array<i64: 3, 32, 128>}]} {
    %c0 = arith.constant 0 : index
    %c0_0 = arith.constant 0 : index
    %c0_1 = arith.constant 0 : index
    %0 = vector.load %arg1[%c0, %c0_0, %c0_1] : memref<3x32x64xbf16, #tpu.memory_space<vmem>>, vector<1x32x64xbf16>
    %1 = vector.shape_cast %0 : vector<1x32x64xbf16> to vector<32x64xbf16>
    %c0_2 = arith.constant 0 : index
    %c0_3 = arith.constant 0 : index
    %c0_4 = arith.constant 0 : index
    %2 = vector.load %arg2[%c0_2, %c0_3, %c0_4] : memref<3x64x128xbf16, #tpu.memory_space<vmem>>, vector<1x64x128xbf16>
    %3 = vector.shape_cast %2 : vector<1x64x128xbf16> to vector<64x128xbf16>
    %cst = arith.constant dense<0.000000e+00> : vector<32x128xf32>
    %4 = tpu.matmul %1, %3, %cst {dimension_numbers = #tpu.dot_dimension_numbers<[1], [0], [0], [1], [0, 0, 1, 1], [], []>} : vector<32x64xbf16>, vector<64x128xbf16>, vector<32x128xf32> -> vector<32x128xf32>
    %c0_5 = arith.constant 0 : index
    %c0_6 = arith.constant 0 : index
    %c0_7 = arith.constant 0 : index
    %5 = vector.load %arg3[%c0_5, %c0_6, %c0_7] : memref<3x1x128xf32, #tpu.memory_space<vmem>>, vector<1x1x128xf32>
    %6 = vector.shape_cast %5 : vector<1x1x128xf32> to vector<1x128xf32>
    %7 = vector.broadcast %6 : vector<1x128xf32> to vector<32x128xf32>
    %8 = arith.addf %4, %7 : vector<32x128xf32>
    %c0_8 = arith.constant 0 : index
    %c0_9 = arith.constant 0 : index
    %c0_10 = arith.constant 0 : index
    %9 = vector.load %arg4[%c0_8, %c0_9, %c0_10] : memref<3x32x128xi8, #tpu.memory_space<vmem>>, vector<1x32x128xi8>
    %10 = vector.shape_cast %9 : vector<1x32x128xi8> to vector<32x128xi8>
    %c0_i8 = arith.constant 0 : i8
    %11 = vector.broadcast %c0_i8 : i8 to vector<32x128xi8>
    %12 = arith.cmpi ne, %10, %11 : vector<32x128xi8>
    %cst_11 = arith.constant 0xFF800000 : f32
    %13 = vector.broadcast %cst_11 : f32 to vector<32x128xf32>
    %14 = arith.select %12, %13, %8 : vector<32x128xi1>, vector<32x128xf32>
    %15 = arith.truncf %14 : vector<32x128xf32> to vector<32x128xbf16>
    %c0_12 = arith.constant 0 : index
    %c0_13 = arith.constant 0 : index
    %c0_14 = arith.constant 0 : index
    %16 = vector.load %arg5[%c0_12, %c0_13, %c0_14] : memref<3x32x128xbf16, #tpu.memory_space<vmem>>, vector<1x32x128xbf16>
    %17 = vector.shape_cast %16 : vector<1x32x128xbf16> to vector<32x128xbf16>
    %18 = vector.shape_cast %15 : vector<32x128xbf16> to vector<1x32x128xbf16>
    tpu.vector_store %arg5[%c0_12, %c0_13, %c0_14], %18 {strides = array<i32>} : memref<3x32x128xbf16, #tpu.memory_space<vmem>>, vector<1x32x128xbf16>,
    %c1 = arith.constant 1 : index
    %c0_15 = arith.constant 0 : index
    %c0_16 = arith.constant 0 : index
    %19 = vector.load %arg1[%c1, %c0_15, %c0_16] : memref<3x32x64xbf16, #tpu.memory_space<vmem>>, vector<1x32x64xbf16>
    %20 = vector.shape_cast %19 : vector<1x32x64xbf16> to vector<32x64xbf16>
    %c1_17 = arith.constant 1 : index
    %c0_18 = arith.constant 0 : index
    %c0_19 = arith.constant 0 : index
    %21 = vector.load %arg2[%c1_17, %c0_18, %c0_19] : memref<3x64x128xbf16, #tpu.memory_space<vmem>>, vector<1x64x128xbf16>
    %22 = vector.shape_cast %21 : vector<1x64x128xbf16> to vector<64x128xbf16>
    %cst_20 = arith.constant dense<0.000000e+00> : vector<32x128xf32>
    %23 = tpu.matmul %20, %22, %cst_20 {dimension_numbers = #tpu.dot_dimension_numbers<[1], [0], [0], [1], [0, 0, 1, 1], [], []>} : vector<32x64xbf16>, vector<64x128xbf16>, vector<32x128xf32> -> vector<32x128xf32>
    %c1_21 = arith.constant 1 : index
    %c0_22 = arith.constant 0 : index
    %c0_23 = arith.constant 0 : index
    %24 = vector.load %arg3[%c1_21, %c0_22, %c0_23] : memref<3x1x128xf32, #tpu.memory_space<vmem>>, vector<1x1x128xf32>
    %25 = vector.shape_cast %24 : vector<1x1x128xf32> to vector<1x128xf32>
    %26 = vector.broadcast %25 : vector<1x128xf32> to vector<32x128xf32>
    %27 = arith.addf %23, %26 : vector<32x128xf32>
    %c1_24 = arith.constant 1 : index
    %c0_25 = arith.constant 0 : index
    %c0_26 = arith.constant 0 : index
    %28 = vector.load %arg4[%c1_24, %c0_25, %c0_26] : memref<3x32x128xi8, #tpu.memory_space<vmem>>, vector<1x32x128xi8>
    %29 = vector.shape_cast %28 : vector<1x32x128xi8> to vector<32x128xi8>
    %c0_i8_27 = arith.constant 0 : i8
    %30 = vector.broadcast %c0_i8_27 : i8 to vector<32x128xi8>
    %31 = arith.cmpi ne, %29, %30 : vector<32x128xi8>
    %cst_28 = arith.constant 0xFF800000 : f32
    %32 = vector.broadcast %cst_28 : f32 to vector<32x128xf32>
    %33 = arith.select %31, %32, %27 : vector<32x128xi1>, vector<32x128xf32>
    %34 = arith.truncf %33 : vector<32x128xf32> to vector<32x128xbf16>
    %c1_29 = arith.constant 1 : index
    %c0_30 = arith.constant 0 : index
    %c0_31 = arith.constant 0 : index
    %35 = vector.load %arg5[%c1_29, %c0_30, %c0_31] : memref<3x32x128xbf16, #tpu.memory_space<vmem>>, vector<1x32x128xbf16>
    %36 = vector.shape_cast %35 : vector<1x32x128xbf16> to vector<32x128xbf16>
    %37 = vector.shape_cast %34 : vector<32x128xbf16> to vector<1x32x128xbf16>
    tpu.vector_store %arg5[%c1_29, %c0_30, %c0_31], %37 {strides = array<i32>} : memref<3x32x128xbf16, #tpu.memory_space<vmem>>, vector<1x32x128xbf16>,
    %c2 = arith.constant 2 : index
    %c0_32 = arith.constant 0 : index
    %c0_33 = arith.constant 0 : index
    %38 = vector.load %arg1[%c2, %c0_32, %c0_33] : memref<3x32x64xbf16, #tpu.memory_space<vmem>>, vector<1x32x64xbf16>
    %39 = vector.shape_cast %38 : vector<1x32x64xbf16> to vector<32x64xbf16>
    %c2_34 = arith.constant 2 : index
    %c0_35 = arith.constant 0 : index
    %c0_36 = arith.constant 0 : index
    %40 = vector.load %arg2[%c2_34, %c0_35, %c0_36] : memref<3x64x128xbf16, #tpu.memory_space<vmem>>, vector<1x64x128xbf16>
    %41 = vector.shape_cast %40 : vector<1x64x128xbf16> to vector<64x128xbf16>
    %cst_37 = arith.constant dense<0.000000e+00> : vector<32x128xf32>
    %42 = tpu.matmul %39, %41, %cst_37 {dimension_numbers = #tpu.dot_dimension_numbers<[1], [0], [0], [1], [0, 0, 1, 1], [], []>} : vector<32x64xbf16>, vector<64x128xbf16>, vector<32x128xf32> -> vector<32x128xf32>
    %c2_38 = arith.constant 2 : index
    %c0_39 = arith.constant 0 : index
    %c0_40 = arith.constant 0 : index
    %43 = vector.load %arg3[%c2_38, %c0_39, %c0_40] : memref<3x1x128xf32, #tpu.memory_space<vmem>>, vector<1x1x128xf32>
    %44 = vector.shape_cast %43 : vector<1x1x128xf32> to vector<1x128xf32>
    %45 = vector.broadcast %44 : vector<1x128xf32> to vector<32x128xf32>
    %46 = arith.addf %42, %45 : vector<32x128xf32>
    %c2_41 = arith.constant 2 : index
    %c0_42 = arith.constant 0 : index
    %c0_43 = arith.constant 0 : index
    %47 = vector.load %arg4[%c2_41, %c0_42, %c0_43] : memref<3x32x128xi8, #tpu.memory_space<vmem>>, vector<1x32x128xi8>
    %48 = vector.shape_cast %47 : vector<1x32x128xi8> to vector<32x128xi8>
    %c0_i8_44 = arith.constant 0 : i8
    %49 = vector.broadcast %c0_i8_44 : i8 to vector<32x128xi8>
    %50 = arith.cmpi ne, %48, %49 : vector<32x128xi8>
    %cst_45 = arith.constant 0xFF800000 : f32
    %51 = vector.broadcast %cst_45 : f32 to vector<32x128xf32>
    %52 = arith.select %50, %51, %46 : vector<32x128xi1>, vector<32x128xf32>
    %53 = arith.truncf %52 : vector<32x128xf32> to vector<32x128xbf16>
    %c2_46 = arith.constant 2 : index
    %c0_47 = arith.constant 0 : index
    %c0_48 = arith.constant 0 : index
    %54 = vector.load %arg5[%c2_46, %c0_47, %c0_48] : memref<3x32x128xbf16, #tpu.memory_space<vmem>>, vector<1x32x128xbf16>
    %55 = vector.shape_cast %54 : vector<1x32x128xbf16> to vector<32x128xbf16>
    %56 = vector.shape_cast %53 : vector<32x128xbf16> to vector<1x32x128xbf16>
    tpu.vector_store %arg5[%c2_46, %c0_47, %c0_48], %56 {strides = array<i32>} : memref<3x32x128xbf16, #tpu.memory_space<vmem>>, vector<1x32x128xbf16>,
    return
  }
  func.func @transform_0(%arg0: i32) -> (i32, i32, i32) {
    %c0_i32 = arith.constant 0 : i32
    %c0_i32_0 = arith.constant 0 : i32
    %c0_i32_1 = arith.constant 0 : i32
    return %arg0, %c0_i32, %c0_i32_0 : i32, i32, i32
  }
  func.func @transform_1(%arg0: i32) -> (i32, i32, i32) {
    %c0_i32 = arith.constant 0 : i32
    %c0_i32_0 = arith.constant 0 : i32
    %c0_i32_1 = arith.constant 0 : i32
    return %arg0, %c0_i32, %c0_i32_0 : i32, i32, i32
  }
  func.func @transform_2(%arg0: i32) -> (i32, i32, i32) {
    %c0_i32 = arith.constant 0 : i32
    %c0_i32_0 = arith.constant 0 : i32
    %c0_i32_1 = arith.constant 0 : i32
    return %arg0, %c0_i32, %c0_i32_0 : i32, i32, i32
  }
  func.func @transform_3(%arg0: i32) -> (i32, i32, i32) {
    %c0_i32 = arith.constant 0 : i32
    %c0_i32_0 = arith.constant 0 : i32
    %c0_i32_1 = arith.constant 0 : i32
    return %arg0, %c0_i32, %c0_i32_0 : i32, i32, i32
  }
  func.func @transform_4(%arg0: i32) -> (i32, i32, i32) {
    %c0_i32 = arith.constant 0 : i32
    %c0_i32_0 = arith.constant 0 : i32
    %c0_i32_1 = arith.constant 0 : i32
    return %arg0, %c0_i32, %c0_i32_0 : i32, i32, i32
  }
}

</mosaic_0001>

<bundles_post_ra>
// kernel: tpu_custom_call.1
= control target key start
LH: loop header
LB: loop body
LE: loop exit
PB: predicated region body
PF: predicated region fallthrough
CT: control target
= control target key end

     0   :  { %9 = vsyncpa [#allocation3], 0  ;;  %s876_s0 = inlined_call_operand.hbm [shape: bf16[3,32,64], index: 0, kind: input, shape index: {}]   ;;  %s877_s1 = inlined_call_operand.hbm [shape: bf16[3,64,128], index: 1, kind: input, shape index: {}]   ;;  %s878_s2 = inlined_call_operand.hbm [shape: f32[3,1,128], index: 2, kind: input, shape index: {}]   ;;  %s879_s3 = inlined_call_operand.hbm [shape: s8[3,32,128], index: 3, kind: input, shape index: {}]   ;;  %s880_s4 = inlined_call_operand.hbm [shape: bf16[3,32,128], index: 4, kind: output, shape index: {}]  }
   0x1   :  { %10 = vsyncpa [#allocation6], 0 }
   0x2   :  { %11 = vsyncpa [#allocation9], 0 }
   0x3   :  { %12 = vsyncpa [#allocation4], 0  ;;  %s30_s17 = sshll.u32 %s877_s1, 4  ;;  %s746_s18 = smov [#allocation5]   ;;  %s31_s17 = int_to_ptr.hbm [resolvable:$true] %s30_s17 }
   0x4   :  { %s32_s19 = sshll.u32 %s746_s18, 4  ;;  %s17_s22 = sshll.u32 %s876_s0, 4  ;;  %s33_s19 = int_to_ptr.vmem [resolvable:$true] %s32_s19  ;;  %s18_s22 = int_to_ptr.hbm [resolvable:$true] %s17_s22 }
   0x5   :  { %s747_s23 = smov 64   ;;  %s748_s24 = smov 4  }
   0x6   :  { %38 = dma.hbm_to_vmem [thread:$0]  %s31_s17, 1536, %s33_s19, [#allocation6], %s747_s23, %s747_s23, %s748_s24  }
   0x7   :  { %s749_s25 = smov [#allocation2]   ;;  %s43_s1 = sshll.u32 %s878_s2, 4  ;;  %s44_s1 = int_to_ptr.hbm [resolvable:$true] %s43_s1 }
   0x8   :  { %s19_s26 = sshll.u32 %s749_s25, 4  ;;  %s750_s0 = smov [#allocation7]   ;;  %s20_s26 = int_to_ptr.vmem [resolvable:$true] %s19_s26 }
   0x9   :  { %25 = dma.hbm_to_vmem [thread:$0]  %s18_s22, 768, %s20_s26, [#allocation3], %s747_s23, %s747_s23, %s748_s24  }
   0xa   :  { %s45_s29 = sshll.u32 %s750_s0, 4  ;;  %s56_s6 = sshll.u32 %s879_s3, 4  ;;  %s46_s29 = int_to_ptr.vmem [resolvable:$true] %s45_s29  ;;  %s57_s6 = int_to_ptr.hbm [resolvable:$true] %s56_s6 }
   0xb   :  { %s751_s7 = smov 16   ;;  %s752_s8 = smov 1  }
   0xc   :  { %51 = dma.hbm_to_vmem [thread:$0]  %s44_s1, 48, %s46_s29, [#allocation6], %s751_s7, %s751_s7, %s752_s8  }
   0xd   :  { %s753_s9 = smov [#allocation8]   ;;  %s754_s2 = smov 128  }
   0xe   :  { %s58_s10 = sshll.u32 %s753_s9, 4  ;;  %s755_s11 = smov 8   ;;  %s59_s10 = int_to_ptr.vmem [resolvable:$true] %s58_s10 }
   0xf   :  { %64 = dma.hbm_to_vmem [thread:$0]  %s57_s6, 384, %s59_s10, [#allocation9], %s754_s2, %s754_s2, %s755_s11  }
  0x10   :  { %738 = dma.done.wait [#allocation3], 768  }
  0x11   :  { %739 = vsyncadd [#allocation3], 4294966528 }
  0x12   :  { %740 = dma.done.wait [#allocation6], 1584  }
  0x13   :  { %741 = vsyncadd [#allocation6], 4294965712 }
  0x14   :  { %742 = dma.done.wait [#allocation9], 384  }
  0x15   :  { %743 = vsyncadd [#allocation9], 4294966912  ;;  %v559_v0 = vld [vmem:[#allocation5 + $0x38] sm:$0xff]  ;;  %v558_v3 = vld [vmem:[#allocation5 + $0x30] sm:$0xff]  ;;  %vm134_vm0 = vcmask 523264   ;;  %v756_v21 = vmov 0  }
  0x16   :  { %v565_v1 = vld [vmem:[#allocation5 + $0x58] sm:$0xff]  ;;  %266 = vmatpush.bf16.msra.mxu1 %v559_v0  ;;  %v564_v4 = vld [vmem:[#allocation5 + $0x50] sm:$0xff]  ;;  %v557_v6 = vld [vmem:[#allocation5 + $0x28] sm:$0xff]  ;;  %s757_s3 = smov [#allocation10]   ;;  %s455_s15 = sshll.u32 %s880_s4, 4  ;;  %s456_s15 = int_to_ptr.hbm [resolvable:$true] %s455_s15 }
  0x17   :  { %v553_v2 = vld [vmem:[#allocation5 + $0x18] sm:$0xff]  ;;  %389 = vmatpush.bf16.msra.mxu2 %v565_v1  ;;  %v552_v5 = vld [vmem:[#allocation5 + $0x10] sm:$0xff]  ;;  %v563_v7 = vld [vmem:[#allocation5 + $0x48] sm:$0xff]  ;;  %s453_s12 = sshll.u32 %s757_s3, 4  ;;  %s454_s12 = int_to_ptr.vmem [resolvable:$true] %s453_s12 }
  0x18   :  { %599 = vmatpush.bf16.msra.mxu3 %v553_v2  ;;  %145 = vmatpush.bf16.msra.mxu0 %v553_v2  ;;  %v551_v8 = vld [vmem:[#allocation5 + $0x8] sm:$0xff]  ;;  %v556_v9 = vld [vmem:[#allocation5 + $0x20] sm:$0xff]  ;;  %v560_v13 = vld [vmem:[#allocation2 + $0x20] sm:$0xff] }
  0x19   :  { %v562_v10 = vld [vmem:[#allocation5 + $0x40] sm:$0xff]  ;;  %v549_v14 = vld [vmem:[#allocation2 + $0x8] sm:$0xff]  ;;  %v548_v15 = vld [vmem:[#allocation2] sm:$0xff] }
  0x1a   :  { %267 = vmatpush.bf16.msra.mxu1 %v558_v3  ;;  %v550_v11 = vld [vmem:[#allocation5] sm:$0xff]  ;;  %v555_v16 = vld [vmem:[#allocation2 + $0x18] sm:$0xff]  ;;  %v561_v17 = vld [vmem:[#allocation2 + $0x28] sm:$0xff] }
  0x1b   :  { %390 = vmatpush.bf16.msra.mxu2 %v564_v4  ;;  %v554_v12 = vld [vmem:[#allocation2 + $0x10] sm:$0xff]  ;;  %v282_v18 = vld [vmem:[#allocation8 + $0x8] sm:$0xff]  ;;  %v405_v20 = vld [vmem:[#allocation8 + $0x10] sm:$0xff] }
  0x1c   :  { %600 = vmatpush.bf16.msra.mxu3 %v552_v5  ;;  %146 = vmatpush.bf16.msra.mxu0 %v552_v5  ;;  %v160_v19 = vld [vmem:[#allocation8] sm:$0xff]  ;;  %vm283_vm1 = vnez %v282_v18  ;;  %vm406_vm3 = vnez %v405_v20  ;;  %v617_v54 = vld [vmem:[#allocation7] ss:$0 sm:$0xff]  ;;  %v812_v58 = vld [vmem:[#allocation7 + $0x1] ss:$0 sm:$0xff] }
  0x1d   :  { %vm161_vm2 = vnez %v160_v19  ;;  %v284_v23 = vsel %vm283_vm1, 16843009, %v756_v21  ;;  %v804_v26 = vsel %vm406_vm3, 16843009, %v756_v21 }
  0x1e   :  { %268 = vmatpush.bf16.msra.mxu1 %v557_v6  ;;  %v162_v22 = vsel %vm161_vm2, 16843009, %v756_v21  ;;  %v285_v25 = vunpack.c.0.s8 %v284_v23  ;;  %v286_v27 = vunpack.c.1.s8 %v284_v23  ;;  %v408_v29 = vunpack.c.0.s8 %v804_v26 }
  0x1f   :  { %391 = vmatpush.bf16.msra.mxu2 %v563_v7  ;;  %v163_v24 = vunpack.c.0.s8 %v162_v22  ;;  %v164_v28 = vunpack.c.1.s8 %v162_v22  ;;  %v409_v33 = vunpack.c.1.s8 %v804_v26  ;;  %v165_v34 = vunpack.c.2.s8 %v162_v22 }
  0x20   :  { %601 = vmatpush.bf16.msra.mxu3 %v551_v8  ;;  %147 = vmatpush.bf16.msra.mxu0 %v551_v8  ;;  %v289_v31 = vpack.c.b16 %v285_v25, %v285_v25  ;;  %v291_v32 = vpack.c.b16 %v286_v27, %v286_v27  ;;  %v412_v36 = vpack.c.b16 %v408_v29, %v408_v29  ;;  %v166_v38 = vunpack.c.3.s8 %v162_v22 }
  0x21   :  { %v167_v30 = vpack.c.b16 %v163_v24, %v163_v24  ;;  %v169_v35 = vpack.c.b16 %v164_v28, %v164_v28  ;;  %v414_v41 = vpack.c.b16 %v409_v33, %v409_v33  ;;  %v171_v42 = vpack.c.b16 %v165_v34, %v165_v34 }
  0x22   :  { %269 = vmatpush.bf16.msra.mxu1 %v556_v9  ;;  %v290_v39 = vpack.c.b8 %v289_v31, %v289_v31  ;;  %v292_v40 = vpack.c.b8 %v291_v32, %v291_v32  ;;  %v413_v44 = vpack.c.b8 %v412_v36, %v412_v36  ;;  %v173_v45 = vpack.c.b16 %v166_v38, %v166_v38 }
  0x23   :  { %392 = vmatpush.bf16.msra.mxu2 %v562_v10  ;;  %v168_v37 = vpack.c.b8 %v167_v30, %v167_v30  ;;  %v170_v43 = vpack.c.b8 %v169_v35, %v169_v35  ;;  %v415_v46 = vpack.c.b8 %v414_v41, %v414_v41  ;;  %v172_v47 = vpack.c.b8 %v171_v42, %v171_v42 }
  0x24   :  { %602 = vmatpush.bf16.msra.mxu3 %v550_v11  ;;  %148 = vmatpush.bf16.msra.mxu0 %v550_v11  ;;  %vm297_vm5 = vnez %v290_v39  ;;  %vm298_vm6 = vnez %v292_v40  ;;  %vm420_vm8 = vnez %v413_v44  ;;  %v174_v53 = vpack.c.b8 %v173_v45, %v173_v45 }
  0x25   :  { %520 = vmatmul.msk.bf16.vlgmr.msra.gmra.mxu1 %vm134_vm0, %v554_v12  ;;  %vm175_vm4 = vnez %v168_v37  ;;  %vm176_vm7 = vnez %v170_v43  ;;  %v301_v50 = vsel %vm297_vm5, 16843009, %v756_v21  ;;  %v302_v51 = vsel %vm298_vm6, 16843009, %v756_v21 }
  0x26   :  { %546 = vmatmul.msk.bf16.vlgmr.msra.gmra.mxu2 %vm134_vm0, %v560_v13  ;;  %v179_v49 = vsel %vm175_vm4, 16843009, %v756_v21  ;;  %vm421_vm9 = vnez %v415_v46  ;;  %v287_v55 = vunpack.c.2.s8 %v284_v23  ;;  %v180_v56 = vsel %vm176_vm7, 16843009, %v756_v21 }
  0x27   :  { %495 = vmatmul.msk.bf16.vlgmr.msra.gmra.mxu3 %vm134_vm0, %v549_v14  ;;  %494 = vmatmul.msk.bf16.vlgmr.msra.gmra.mxu0 %vm134_vm0, %v548_v15  ;;  %v288_v57 = vunpack.c.3.s8 %v284_v23  ;;  %v183_v59 = vunpack.c.0.s8 %v179_v49  ;;  %vm177_vm10 = vnez %v172_v47  ;;  %v305_v60 = vunpack.c.0.s8 %v301_v50 }
  0x28   :  { %v424_v61 = vsel %vm420_vm8, 16843009, %v756_v21  ;;  %v306_v62 = vunpack.c.0.s8 %v302_v51  ;;  %v425_v63 = vsel %vm421_vm9, 16843009, %v756_v21  ;;  %v184_v0 = vunpack.c.0.s8 %v180_v56 }
  0x29   :  { %vm178_vm11 = vnez %v174_v53  ;;  %v181_v3 = vsel %vm177_vm10, 16843009, %v756_v21  ;;  %v293_v4 = vpack.c.b16 %v287_v55, %v287_v55  ;;  %v295_v5 = vpack.c.b16 %v288_v57, %v288_v57 }
  0x2a   :  { %v428_v7 = vunpack.c.0.s8 %v424_v61  ;;  %vm818_vm12 = vcmp.ne.s32.totalorder %v183_v59, 0  ;;  %v410_v10 = vunpack.c.2.s8 %v804_v26  ;;  %vm823_vm13 = vcmp.ne.s32.totalorder %v305_v60, 0 }
  0x2b   :  { %vm827_vm14 = vcmp.ne.s32.totalorder %v306_v62, 0  ;;  %v182_v14 = vsel %vm178_vm11, 16843009, %v756_v21  ;;  %v411_v15 = vunpack.c.3.s8 %v804_v26  ;;  %v185_v18 = vunpack.c.0.s8 %v181_v3 }
  0x2c   :  { %v429_v19 = vunpack.c.0.s8 %v425_v63  ;;  %vm188_vm15 = vcmp.ne.s32.totalorder %v184_v0, 0  ;;  %v294_v23 = vpack.c.b8 %v293_v4, %v293_v4  ;;  %v296_v25 = vpack.c.b8 %v295_v5, %v295_v5 }
  0x2d   :  { %v186_v28 = vunpack.c.0.s8 %v182_v14  ;;  %v416_v29 = vpack.c.b16 %v410_v10, %v410_v10  ;;  %v418_v33 = vpack.c.b16 %v411_v15, %v411_v15  ;;  %vm847_vm1 = vcmp.ne.s32.totalorder %v428_v7, 0 }
  0x2e   :  { %vm851_vm2 = vcmp.ne.s32.totalorder %v429_v19, 0  ;;  %vm299_vm3 = vnez %v294_v23  ;;  %vm300_vm4 = vnez %v296_v25 }
  0x2f   :  { %vm190_vm5 = vcmp.ne.s32.totalorder %v186_v28, 0  ;;  %v417_v45 = vpack.c.b8 %v416_v29, %v416_v29  ;;  %v419_v46 = vpack.c.b8 %v418_v33, %v418_v33  ;;  %v303_v49 = vsel %vm299_vm3, 16843009, %v756_v21 }
  0x30   :  { %v304_v50 = vsel %vm300_vm4, 16843009, %v756_v21  ;;  %v307_v55 = vunpack.c.0.s8 %v303_v49 }
  0x31   :  { %vm422_vm6 = vnez %v417_v45  ;;  %v308_v56 = vunpack.c.0.s8 %v304_v50  ;;  %vm423_vm7 = vnez %v419_v46 }
  0x32   :  { %v426_v59 = vsel %vm422_vm6, 16843009, %v756_v21  ;;  %v427_v60 = vsel %vm423_vm7, 16843009, %v756_v21  ;;  %vm311_vm8 = vcmp.ne.s32.totalorder %v307_v55, 0 }
  0x33   :  { %vm312_vm9 = vcmp.ne.s32.totalorder %v308_v56, 0  ;;  %v430_v63 = vunpack.c.0.s8 %v426_v59  ;;  %v431_v0 = vunpack.c.0.s8 %v427_v60 }
  0x35   :  { %521 = vmatmul.msk.bf16.gmra.mxu1 %vm134_vm0, %v555_v16  ;;  %v833_v16 = vld [vmem:[#allocation7 + $0x2] ss:$0 sm:$0xff]  ;;  %vm434_vm10 = vcmp.ne.s32.totalorder %v430_v63, 0  ;;  %vm435_vm11 = vcmp.ne.s32.totalorder %v431_v0, 0 }
  0x36   :  { %547 = vmatmul.msk.bf16.gmra.mxu2 %vm134_vm0, %v561_v17  ;;  %vm843_vm0 = vcmp.ne.s32.totalorder %v185_v18, 0 }
  0xa2   :  { %v271_v48 = vpop.f32.mrf.mxu1 }
  0xa3   :  { %v272_v6 = vadd.f32 %v812_v58, %v271_v48 }
  0xa4   :  { %v150_v52 = vpop.f32.mrf.mxu0 }
  0xa5   :  { %v151_v2 = vadd.f32 %v617_v54, %v150_v52  ;;  %v313_v27 = vsel %vm823_vm13, -inf, %v272_v6 }
  0xa7   :  { %v191_v22 = vsel %vm818_vm12, -inf, %v151_v2 }
  0xa9   :  { %v394_v1 = vpop.f32.mrf.mxu2 }
  0xaa   :  { %v155_v9 = vpop.f32.mrf.mxu3  ;;  %v273_v12 = vpop.f32.mrf.mxu1  ;;  %v395_v34 = vadd.f32 %v833_v16, %v394_v1 }
  0xab   :  { %v274_v17 = vadd.f32 %v812_v58, %v273_v12  ;;  %v156_v31 = vadd.f32 %v617_v54, %v155_v9 }
  0xac   :  { %v152_v20 = vpop.f32.mrf.mxu0  ;;  %v436_v47 = vsel %vm847_vm1, -inf, %v395_v34 }
  0xad   :  { %v153_v24 = vadd.f32 %v617_v54, %v152_v20  ;;  %v314_v26 = vsel %vm827_vm14, -inf, %v274_v17  ;;  %v193_v42 = vsel %vm843_vm0, -inf, %v156_v31 }
  0xae   :  { %v579_v30 = vpack.c.bf16 %v314_v26, %v313_v27 }
  0xaf   :  { %v192_v32 = vsel %vm188_vm15, -inf, %v153_v24 }
  0xb0   :  { %v569_v36 = vpack.c.bf16 %v192_v32, %v191_v22  ;;  %580 = vst [vmem:[#allocation10 + $0x10] sm:$0xff] %v579_v30  }
  0xb1   :  { %v396_v38 = vpop.f32.mrf.mxu2 }
  0xb2   :  { %v397_v40 = vadd.f32 %v833_v16, %v396_v38  ;;  %570 = vst [vmem:[#allocation10] sm:$0xff] %v569_v36   ;;  %v157_v41 = vpop.f32.mrf.mxu3  ;;  %v276_v43 = vpop.f32.mrf.mxu1 }
  0xb3   :  { %v158_v44 = vadd.f32 %v617_v54, %v157_v41  ;;  %v277_v57 = vadd.f32 %v812_v58, %v276_v43 }
  0xb4   :  { %v437_v48 = vsel %vm851_vm2, -inf, %v397_v40 }
  0xb5   :  { %v589_v51 = vpack.c.bf16 %v437_v48, %v436_v47  ;;  %v194_v52 = vsel %vm190_vm5, -inf, %v158_v44  ;;  %v315_v1 = vsel %vm311_vm8, -inf, %v277_v57 }
  0xb6   :  { %v574_v53 = vpack.c.bf16 %v194_v52, %v193_v42 }
  0xb7   :  { %590 = vst [vmem:[#allocation10 + $0x20] sm:$0xff] %v589_v51  }
  0xb8   :  { %596 = vst [vmem:[#allocation10 + $0x8] sm:$0xff] %v574_v53  }
  0xb9   :  { %v399_v54 = vpop.f32.mrf.mxu2 }
  0xba   :  { %v278_v61 = vpop.f32.mrf.mxu1  ;;  %v400_v4 = vadd.f32 %v833_v16, %v399_v54 }
  0xbb   :  { %v279_v62 = vadd.f32 %v812_v58, %v278_v61 }
  0xbc   :  { %v438_v21 = vsel %vm434_vm10, -inf, %v400_v4 }
  0xbd   :  { %v316_v2 = vsel %vm312_vm9, -inf, %v279_v62 }
  0xbe   :  { %v584_v3 = vpack.c.bf16 %v316_v2, %v315_v1 }
  0xc0   :  { %597 = vst [vmem:[#allocation10 + $0x18] sm:$0xff] %v584_v3  }
  0xc1   :  { %v401_v5 = vpop.f32.mrf.mxu2 }
  0xc2   :  { %v402_v6 = vadd.f32 %v833_v16, %v401_v5 }
  0xc4   :  { %v439_v58 = vsel %vm435_vm11, -inf, %v402_v6 }
  0xc5   :  { %v594_v7 = vpack.c.bf16 %v439_v58, %v438_v21 }
  0xc7   :  { %598 = vst [vmem:[#allocation10 + $0x28] sm:$0xff] %v594_v7  }
  0xc8   :  { %461 = dma.vmem_to_hbm [thread:$0]  %s454_s12, 768, %s456_s15, [#allocation4], %s747_s23, %s747_s23, %s748_s24  }
  0xc9   :  { %744 = dma.done.wait [#allocation4], 768  }
  0xca   :  { %745 = vsyncadd [#allocation4], 4294966528 }
  0xcb   :  { %466 = vsyncpa [#allocation3], 1 }
  0xcc   :  { %467 = vsyncpa [#allocation6], 1 }
  0xcd   :  { %468 = vsyncpa [#allocation9], 1 }
  0xce   :  { %469 = vsyncpa [#allocation4], 1 }

</bundles_post_ra>
